<compile_context>
chip_gen: v5e
topology: v5e:2x2
jax: 0.10.0
libtpu: 0.0.40
codegen_flags: <defaults>
</compile_context>

<pallas_src>
import functools
import math

import jax
import jax.numpy as jnp
import numpy as np
from jax import lax
from jax.experimental import pallas as pl
from jax.experimental.pallas import tpu as pltpu


def _styled_conv_kernel(x_ref, s_ref, wband_ref, fbias_ref, noise_ref, nw_ref,
                        out_ref, *, K, H):
    """One batch sample per grid step, everything lane-dense.

    x_ref:     (1, Hp, Wp*C_in)        bf16, zero-padded, W and C_in folded on lanes
    s_ref:     (1, 1, Wp*C_in)         f32, normalized style, tiled over Wp
    wband_ref: (K, Wp*C_in, W*C_out)   bf16, banded-Toeplitz demodulated conv weight
    fbias_ref: (1, W*C_out)            f32, FusedLeakyReLU bias tiled over W
    noise_ref: (1, H, W*C_out)         f32, per-sample noise repeated over C_out
    nw_ref:    (1,) in SMEM            NoiseInjection scalar weight
    out_ref:   (1, H, W*C_out)         f32
    """
    # ---- modulate input (style already normalized in the wrapper) ----
    xm = (x_ref[0] * s_ref[0]).astype(jnp.bfloat16)          # (Hp, Wp*C_in)

    # ---- KxK conv as K row-band matmuls on the MXU ----
    #   out[h, w*C_out+co] = sum_dy  x_mod[h+dy, :] @ wband[dy, :, :]
    acc = jnp.dot(xm[0:H, :], wband_ref[0],
                  preferred_element_type=jnp.float32)         # (H, W*C_out) f32
    for dy in range(1, K):
        acc = acc + jnp.dot(xm[dy:dy + H, :], wband_ref[dy],
                            preferred_element_type=jnp.float32)

    # ---- NoiseInjection ----
    out = acc + nw_ref[0] * noise_ref[0]

    # ---- FusedLeakyReLU: (x + bias) -> leaky_relu(0.2) -> * sqrt(2) ----
    out = out + fbias_ref[...]
    out = jnp.where(out >= 0.0, out, 0.2 * out) * math.sqrt(2.0)

    out_ref[0] = out.astype(out_ref.dtype)                    # dense 128-lane store


def styled_conv(x_nchw, style, noise_nchw, params):
    """StyledConv forward (upsample=False, demodulate=True, use_noise=True)."""
    B, C_in, H, W = x_nchw.shape
    w_conv = params["conv_weight"]                    # (C_out, C_in, K, K)
    C_out, _, K, _ = w_conv.shape
    D = params["mod_weight"].shape[1]
    pad = K // 2
    Hp, Wp = H + 2 * pad, W + 2 * pad
    eps = 1e-8

    # ---- style modulation (EqualLinear, bias_init=1) + new_demodulation normalize ----
    mod_scale = 1.0 / math.sqrt(D)
    s = style.astype(jnp.float32) @ (params["mod_weight"] * mod_scale).T + params["mod_bias"]
    s = s * lax.rsqrt(jnp.mean(s * s, axis=1, keepdims=True) + eps)      # (B, C_in)
    s_tiled = jnp.tile(s, (1, Wp)).reshape(B, 1, Wp * C_in)              # (B,1,Wp*C_in)

    # ---- style-independent weight demodulation (hoisted out of the kernel) ----
    conv_scale = 1.0 / math.sqrt(C_in * K * K)
    w = w_conv.astype(jnp.float32) * conv_scale
    demod = lax.rsqrt(jnp.sum(w * w, axis=(1, 2, 3), keepdims=True) + eps)
    w = w * demod                                                        # (C_out,C_in,K,K)
    w_hwio = jnp.transpose(w, (2, 3, 1, 0))                              # (K,K,C_in,C_out)

    # ---- banded-Toeplitz weight for lane-dense packed output (small-channel regime) ----
    #   wband[dy, wp*C_in+ci, w*C_out+co] = w_hwio[dy, wp-w, ci, co]  if 0 <= wp-w < K else 0
    bands = []
    for dy in range(K):
        band = jnp.zeros((Wp * C_in, W * C_out), jnp.float32)
        for dx in range(K):
            sel = jnp.zeros((Wp, W), jnp.float32).at[jnp.arange(W) + dx,
                                                     jnp.arange(W)].set(1.0)
            band = band + jnp.kron(sel, w_hwio[dy, dx])
        bands.append(band)
    w_band = jnp.stack(bands).astype(jnp.bfloat16)           # (K, Wp*C_in, W*C_out)

    # ---- inputs, lane-dense packed ----
    x_nhwc = jnp.transpose(x_nchw, (0, 2, 3, 1)).astype(jnp.float32)
    x_pad = jnp.pad(x_nhwc, ((0, 0), (pad, pad), (pad, pad), (0, 0)))
    x_pack = x_pad.reshape(B, Hp, Wp * C_in).astype(jnp.bfloat16)        # halve HBM->VMEM bytes
    noise_pack = jnp.repeat(noise_nchw[:, 0].astype(jnp.float32), C_out, axis=-1)  # (B,H,W*C_out)
    fbias_pack = jnp.tile(params["flrelu_bias"].astype(jnp.float32), W).reshape(1, W * C_out)
    nw = params["noise_weight"].reshape(1).astype(jnp.float32)

    kernel = functools.partial(_styled_conv_kernel, K=K, H=H)

    out_pack = pl.pallas_call(
        kernel,
        out_shape=jax.ShapeDtypeStruct((B, H, W * C_out), jnp.float32),
        grid=(B,),
        in_specs=[
            pl.BlockSpec((1, Hp, Wp * C_in), lambda b: (b, 0, 0)),
            pl.BlockSpec((1, 1, Wp * C_in), lambda b: (b, 0, 0)),
            pl.BlockSpec((K, Wp * C_in, W * C_out), lambda b: (0, 0, 0)),
            pl.BlockSpec((1, W * C_out), lambda b: (0, 0)),
            pl.BlockSpec((1, H, W * C_out), lambda b: (b, 0, 0)),
            pl.BlockSpec(memory_space=pltpu.MemorySpace.SMEM),
        ],
        out_specs=pl.BlockSpec((1, H, W * C_out), lambda b: (b, 0, 0)),
        compiler_params=pltpu.CompilerParams(
            dimension_semantics=("parallel",)),   # batch axis -> both TCs on v7x
    )(x_pack, s_tiled, w_band, fbias_pack, noise_pack, nw)

    out = out_pack.reshape(B, H, W, C_out)
    return jnp.transpose(out, (0, 3, 1, 2))       # back to NCHW


def styled_conv_reference(x, style, noise, params):
    """Pure-JAX reference mirroring the PyTorch forward (NCHW, f32)."""
    B, C_in, H, W = x.shape
    w_conv = params["conv_weight"]
    C_out, _, K, _ = w_conv.shape
    D = params["mod_weight"].shape[1]
    s = style @ (params["mod_weight"] * (1.0 / math.sqrt(D))).T + params["mod_bias"]
    s = s * lax.rsqrt(jnp.mean(s * s, axis=1, keepdims=True) + 1e-8)
    w = w_conv * (1.0 / math.sqrt(C_in * K * K))
    demod = lax.rsqrt(jnp.sum(w * w, axis=(1, 2, 3)) + 1e-8)
    w = w * demod[:, None, None, None]
    x_mod = x * s[:, :, None, None]
    out = lax.conv_general_dilated(
        x_mod, w, window_strides=(1, 1), padding=[(K // 2, K // 2)] * 2,
        dimension_numbers=("NCHW", "OIHW", "NCHW"),
        precision=lax.Precision.HIGHEST)
    out = out + params["noise_weight"].reshape(1, 1, 1, 1) * noise
    out = out + params["flrelu_bias"].reshape(1, C_out, 1, 1)
    out = jnp.where(out >= 0.0, out, 0.2 * out) * math.sqrt(2.0)
    return out


if __name__ == "__main__":
    B, C_in, C_out, K, D, H, W = 2, 4, 8, 3, 32, 16, 16
    key = jax.random.PRNGKey(0)
    kx, ks, kn, kw1, kw2 = jax.random.split(key, 5)

    x = jax.random.normal(kx, (B, C_in, H, W), jnp.float32)
    style = jax.random.normal(ks, (B, D), jnp.float32)
    # TODO(synk): PyTorch samples noise internally when noise=None; we pass an explicit
    # deterministic noise tensor instead.
    noise = jax.random.normal(kn, (B, 1, H, W), jnp.float32)

    params = {
        "conv_weight": jax.random.normal(kw1, (C_out, C_in, K, K), jnp.float32),
        "mod_weight": jax.random.normal(kw2, (C_in, D), jnp.float32),
        "mod_bias": jnp.ones((C_in,), jnp.float32),       # EqualLinear bias_init=1
        "flrelu_bias": jnp.zeros((C_out,), jnp.float32),  # FusedLeakyReLU bias init
        "noise_weight": jnp.zeros((1,), jnp.float32),     # NoiseInjection weight init
    }

    out = styled_conv(x, style, noise, params)
    out = jax.block_until_ready(out)

    ref = styled_conv_reference(x, style, noise, params)
    # bf16 matmul operands (f32 accumulation) -> slightly looser tolerance than pure f32.
    np.testing.assert_allclose(np.asarray(out), np.asarray(ref), rtol=5e-2, atol=5e-2)
    print("KERNEL_OK")
</pallas_src>

<mosaic_0001>
module attributes {stable_mosaic.version = 11 : i64} {
  func.func @_styled_conv_kernel(%arg0: i32, %arg1: memref<1x18x72xbf16, #tpu.memory_space<vmem>>, %arg2: memref<1x1x72xf32, #tpu.memory_space<vmem>>, %arg3: memref<3x72x128xbf16, #tpu.memory_space<vmem>>, %arg4: memref<1x128xf32, #tpu.memory_space<vmem>>, %arg5: memref<1x16x128xf32, #tpu.memory_space<vmem>>, %arg6: memref<1xf32, #tpu.memory_space<smem>>, %arg7: memref<1x16x128xf32, #tpu.memory_space<vmem>>) attributes {dimension_semantics = [#tpu.dimension_semantics<parallel>], iteration_bounds = array<i64: 2>, scalar_prefetch = 0 : i64, scratch_operands = 0 : i64, tpu.core_type = #tpu.core_type<tc>, window_params = [{transform_indices = @transform_0, window_bounds = array<i64: 1, 18, 72>}, {transform_indices = @transform_1, window_bounds = array<i64: 1, 1, 72>}, {pipeline_mode = #tpu.pipeline_mode<synchronous>, transform_indices = @transform_2, window_bounds = array<i64: 3, 72, 128>}, {pipeline_mode = #tpu.pipeline_mode<synchronous>, transform_indices = @transform_3, window_bounds = array<i64: 1, 128>}, {transform_indices = @transform_4, window_bounds = array<i64: 1, 16, 128>}, {transform_indices = @transform_5, window_bounds = array<i64: 1>}, {transform_indices = @transform_6, window_bounds = array<i64: 1, 16, 128>}]} {
    %c0 = arith.constant 0 : index
    %c0_0 = arith.constant 0 : index
    %c0_1 = arith.constant 0 : index
    %0 = vector.load %arg1[%c0, %c0_0, %c0_1] : memref<1x18x72xbf16, #tpu.memory_space<vmem>>, vector<1x18x72xbf16>
    %1 = vector.shape_cast %0 : vector<1x18x72xbf16> to vector<18x72xbf16>
    %c0_2 = arith.constant 0 : index
    %c0_3 = arith.constant 0 : index
    %c0_4 = arith.constant 0 : index
    %2 = vector.load %arg2[%c0_2, %c0_3, %c0_4] : memref<1x1x72xf32, #tpu.memory_space<vmem>>, vector<1x1x72xf32>
    %3 = vector.shape_cast %2 : vector<1x1x72xf32> to vector<1x72xf32>
    %4 = arith.extf %1 : vector<18x72xbf16> to vector<18x72xf32>
    %5 = vector.broadcast %3 : vector<1x72xf32> to vector<18x72xf32>
    %6 = arith.mulf %4, %5 : vector<18x72xf32>
    %7 = arith.truncf %6 : vector<18x72xf32> to vector<18x72xbf16>
    %8 = vector.extract_strided_slice %7 {offsets = [0, 0], sizes = [16, 72], strides = [1, 1]} : vector<18x72xbf16> to vector<16x72xbf16>
    %c0_5 = arith.constant 0 : index
    %c0_6 = arith.constant 0 : index
    %c0_7 = arith.constant 0 : index
    %9 = vector.load %arg3[%c0_5, %c0_6, %c0_7] : memref<3x72x128xbf16, #tpu.memory_space<vmem>>, vector<1x72x128xbf16>
    %10 = vector.shape_cast %9 : vector<1x72x128xbf16> to vector<72x128xbf16>
    %cst = arith.constant dense<0.000000e+00> : vector<16x128xf32>
    %11 = tpu.matmul %8, %10, %cst {dimension_numbers = #tpu.dot_dimension_numbers<[1], [0], [0], [1], [0, 0, 1, 1], [], []>} : vector<16x72xbf16>, vector<72x128xbf16>, vector<16x128xf32> -> vector<16x128xf32>
    %12 = vector.extract_strided_slice %7 {offsets = [1, 0], sizes = [16, 72], strides = [1, 1]} : vector<18x72xbf16> to vector<16x72xbf16>
    %c1 = arith.constant 1 : index
    %c0_8 = arith.constant 0 : index
    %c0_9 = arith.constant 0 : index
    %13 = vector.load %arg3[%c1, %c0_8, %c0_9] : memref<3x72x128xbf16, #tpu.memory_space<vmem>>, vector<1x72x128xbf16>
    %14 = vector.shape_cast %13 : vector<1x72x128xbf16> to vector<72x128xbf16>
    %cst_10 = arith.constant dense<0.000000e+00> : vector<16x128xf32>
    %15 = tpu.matmul %12, %14, %cst_10 {dimension_numbers = #tpu.dot_dimension_numbers<[1], [0], [0], [1], [0, 0, 1, 1], [], []>} : vector<16x72xbf16>, vector<72x128xbf16>, vector<16x128xf32> -> vector<16x128xf32>
    %16 = arith.addf %11, %15 : vector<16x128xf32>
    %17 = vector.extract_strided_slice %7 {offsets = [2, 0], sizes = [16, 72], strides = [1, 1]} : vector<18x72xbf16> to vector<16x72xbf16>
    %c2 = arith.constant 2 : index
    %c0_11 = arith.constant 0 : index
    %c0_12 = arith.constant 0 : index
    %18 = vector.load %arg3[%c2, %c0_11, %c0_12] : memref<3x72x128xbf16, #tpu.memory_space<vmem>>, vector<1x72x128xbf16>
    %19 = vector.shape_cast %18 : vector<1x72x128xbf16> to vector<72x128xbf16>
    %cst_13 = arith.constant dense<0.000000e+00> : vector<16x128xf32>
    %20 = tpu.matmul %17, %19, %cst_13 {dimension_numbers = #tpu.dot_dimension_numbers<[1], [0], [0], [1], [0, 0, 1, 1], [], []>} : vector<16x72xbf16>, vector<72x128xbf16>, vector<16x128xf32> -> vector<16x128xf32>
    %21 = arith.addf %16, %20 : vector<16x128xf32>
    %c0_14 = arith.constant 0 : index
    %22 = memref.load %arg6[%c0_14] : memref<1xf32, #tpu.memory_space<smem>>
    %c0_15 = arith.constant 0 : index
    %c0_16 = arith.constant 0 : index
    %c0_17 = arith.constant 0 : index
    %23 = vector.load %arg5[%c0_15, %c0_16, %c0_17] : memref<1x16x128xf32, #tpu.memory_space<vmem>>, vector<1x16x128xf32>
    %24 = vector.shape_cast %23 : vector<1x16x128xf32> to vector<16x128xf32>
    %25 = vector.broadcast %22 : f32 to vector<16x128xf32>
    %26 = arith.mulf %25, %24 : vector<16x128xf32>
    %27 = arith.addf %21, %26 : vector<16x128xf32>
    %c0_18 = arith.constant 0 : index
    %c0_19 = arith.constant 0 : index
    %28 = vector.load %arg4[%c0_18, %c0_19] : memref<1x128xf32, #tpu.memory_space<vmem>>, vector<1x128xf32>
    %29 = vector.broadcast %28 : vector<1x128xf32> to vector<16x128xf32>
    %30 = arith.addf %27, %29 : vector<16x128xf32>
    %cst_20 = arith.constant 0.000000e+00 : f32
    %31 = vector.broadcast %cst_20 : f32 to vector<16x128xf32>
    %32 = arith.cmpf oge, %30, %31 : vector<16x128xf32>
    %cst_21 = arith.constant 2.000000e-01 : f32
    %33 = vector.broadcast %cst_21 : f32 to vector<16x128xf32>
    %34 = arith.mulf %33, %30 : vector<16x128xf32>
    %35 = arith.select %32, %30, %34 : vector<16x128xi1>, vector<16x128xf32>
    %cst_22 = arith.constant 1.41421354 : f32
    %36 = vector.broadcast %cst_22 : f32 to vector<16x128xf32>
    %37 = arith.mulf %35, %36 : vector<16x128xf32>
    %c0_23 = arith.constant 0 : index
    %c0_24 = arith.constant 0 : index
    %c0_25 = arith.constant 0 : index
    %38 = vector.load %arg7[%c0_23, %c0_24, %c0_25] : memref<1x16x128xf32, #tpu.memory_space<vmem>>, vector<1x16x128xf32>
    %39 = vector.shape_cast %38 : vector<1x16x128xf32> to vector<16x128xf32>
    %40 = vector.shape_cast %37 : vector<16x128xf32> to vector<1x16x128xf32>
    tpu.vector_store %arg7[%c0_23, %c0_24, %c0_25], %40 {strides = array<i32>} : memref<1x16x128xf32, #tpu.memory_space<vmem>>, vector<1x16x128xf32>,
    return
  }
  func.func @transform_0(%arg0: i32) -> (i32, i32, i32) {
    %c0_i32 = arith.constant 0 : i32
    %c0_i32_0 = arith.constant 0 : i32
    %c0_i32_1 = arith.constant 0 : i32
    return %arg0, %c0_i32, %c0_i32_0 : i32, i32, i32
  }
  func.func @transform_1(%arg0: i32) -> (i32, i32, i32) {
    %c0_i32 = arith.constant 0 : i32
    %c0_i32_0 = arith.constant 0 : i32
    %c0_i32_1 = arith.constant 0 : i32
    return %arg0, %c0_i32, %c0_i32_0 : i32, i32, i32
  }
  func.func @transform_2(%arg0: i32) -> (i32, i32, i32) {
    %c0_i32 = arith.constant 0 : i32
    %c0_i32_0 = arith.constant 0 : i32
    %c0_i32_1 = arith.constant 0 : i32
    %c0_i32_2 = arith.constant 0 : i32
    return %c0_i32, %c0_i32_0, %c0_i32_1 : i32, i32, i32
  }
  func.func @transform_3(%arg0: i32) -> (i32, i32) {
    %c0_i32 = arith.constant 0 : i32
    %c0_i32_0 = arith.constant 0 : i32
    %c0_i32_1 = arith.constant 0 : i32
    return %c0_i32, %c0_i32_0 : i32, i32
  }
  func.func @transform_4(%arg0: i32) -> (i32, i32, i32) {
    %c0_i32 = arith.constant 0 : i32
    %c0_i32_0 = arith.constant 0 : i32
    %c0_i32_1 = arith.constant 0 : i32
    return %arg0, %c0_i32, %c0_i32_0 : i32, i32, i32
  }
  func.func @transform_5(%arg0: i32) -> i32 {
    %c0_i32 = arith.constant 0 : i32
    %c0_i32_0 = arith.constant 0 : i32
    return %c0_i32 : i32
  }
  func.func @transform_6(%arg0: i32) -> (i32, i32, i32) {
    %c0_i32 = arith.constant 0 : i32
    %c0_i32_0 = arith.constant 0 : i32
    %c0_i32_1 = arith.constant 0 : i32
    return %arg0, %c0_i32, %c0_i32_0 : i32, i32, i32
  }
}

</mosaic_0001>

<bundles_post_ra>
// kernel: tpu_custom_call.1
= control target key start
LH: loop header
LB: loop body
LE: loop exit
PB: predicated region body
PF: predicated region fallthrough
CT: control target
= control target key end

     0   :  { %s1047_s0 = inlined_call_operand.vmem [shape: bf16[2,18,72], index: 0, kind: input, shape index: {}]   ;;  %s1048_s1 = inlined_call_operand.vmem [shape: f32[2,1,72], index: 1, kind: input, shape index: {}]   ;;  %s1049_s2 = inlined_call_operand.hbm [shape: bf16[3,72,128], index: 2, kind: input, shape index: {}]   ;;  %s1050_s3 = inlined_call_operand.vmem [shape: f32[1,128], index: 3, kind: input, shape index: {}]   ;;  %s1051_s4 = inlined_call_operand.vmem [shape: f32[2,16,128], index: 4, kind: input, shape index: {}]   ;;  %s1052_s5 = inlined_call_operand.<no memory space> [shape: f32[1], index: 5, kind: input, shape index: {}]   ;;  %s1053_s6 = inlined_call_operand.hbm [shape: f32[2,16,128], index: 6, kind: output, shape index: {}]  }
   0x1   :  { %11 = sst [smem:[#allocation2]] %s1052_s5 }
   0x2   :  { %12 = vsyncpa [#allocation4], 0 }
   0x3   :  { %13 = vsyncpa [#allocation5], 0 }
   0x4   :  { %15 = vsyncpa [#allocation5 + $0x1], 0  ;;  %s934_s23 = smov 0   ;;  %s936_s24 = smov 0  }
   0x5   :  { %s938_s25 = smov 0   ;;  %s940_s26 = smov 0  }
   0x6 LB: > { %s955_s5 = sadd.s32 4294967295, %s889_s26   ;;  %s652_s27 = sadd.s32 4294967294, %s889_s26   ;;  %s889_s26 = sphi %s940_s26, %s1059_s26   ;;  %s885_s25 = sphi %s938_s25, %s1058_s25   ;;  %s881_s24 = sphi %s936_s24, %s1057_s24   ;;  %s877_s23 = sphi %s934_s23, %s1056_s23  }
   0x7   : > { %s959_s28 = sadd.s32 1, %s889_s26   ;;  %s169_s29 = sadd.s32 1, %s885_s25 }
   0x8   : > { %s166_s30 = ssub.s32 %s889_s26, %s959_s28  ;;  %p179_p0 = scmp.ne.s32.totalorder %s885_s25, %s881_s24 }
   0x9   : > { %p167_p1 = scmp.eq.s32.totalorder %s166_s30, 0  ;;  %p180_p2 = scmp.eq.s32.totalorder %s955_s5, 1 }
   0xa   : > { %p185_p3 = scmp.ne.s32.totalorder %s881_s24, %s877_s23  ;;  %p186_p4 = scmp.eq.s32.totalorder %s652_s27, 1 }
   0xb   : > { %s970_s7 = scalar_select %p167_p1, %s885_s25, %s169_s29  }
   0xc   : > { %p972_p5 = por %p180_p2, %p179_p0  ;;  %p976_p6 = por %p186_p4, %p185_p3 }
   0xd   : > { %p653_p7 = scmp.ge.s32.totalorder %s889_s26, 1  ;;  %p193_p8 = scmp.lt.s32.totalorder %s889_s26, 3 }
   0xe   : > { %p751_p9 = scmp.eq.s32.totalorder %s955_s5, 0  ;;  %s204_s12 = sshll.u32 %s1049_s2, 4  ;;  %s205_s12 = int_to_ptr.hbm [resolvable:$true] %s204_s12 }
   0xf   : > { %p194_p10 = pnand %p653_p7, %p193_p8  ;;  %s891_s13 = smov [#allocation3]  }
  0x10   : > { %s206_s14 = sshll.u32 %s891_s13, 4  ;;  %s892_s15 = smov 64   ;;  %s207_s14 = int_to_ptr.vmem [resolvable:$true] %s206_s14 }
  0x11   : > { %p743_p11 = pneg %p194_p10  ;;  %s893_s16 = smov 4  }
  0x12   : > { %250 = sbr.rel (%p194_p10) target bundleno = 205 (0xcd), region = 44 }
  0x13   : > { %p744_p12 = pnand %p751_p9, %p743_p11 }
  0x15   : > { %746 = dma.hbm_to_vmem [thread:$0]  (!%p744_p12), %s205_s12, 1728, %s207_s14, [#allocation4], %s892_s15, %s892_s15, %s893_s16  }
  0x17   : > { %868 = dma.done.wait (%p751_p9), [#allocation4], 1728  }
  0x18   : > { %870 = vsyncadd (%p751_p9), [#allocation4], 4294965568  ;;  %p289_p13 = scmp.lt.s32.totalorder %s955_s5, 1  ;;  %v337_v0 = vld [vmem:[#allocation3 + $0x44] sm:$0xf]  ;;  %vm390_vm0 = vcmask 1043456  }
  0x19   : > { %v327_v1 = vld [vmem:[#allocation3 + $0x20] sm:$0xf]  ;;  %v463_v2 = vld [vmem:[#allocation3 + $0x68] sm:$0xf]  ;;  %v376_v3 = vunpack.c.l.b16 %v337_v0  ;;  %v722_v10 = vld [vmem:[#allocation3 + $0x18] sm:$0xff]  ;;  %vm464_vm2 = vcmask 1046528  }
  0x1a   : > { %s994_s17 = scalar_select %p289_p13, %s955_s5, 1  ;;  %v425_v4 = vunpack.c.l.b16 %v327_v1  ;;  %v485_v5 = vunpack.c.l.b16 %v463_v2  ;;  %v726_v9 = vld [vmem:[#allocation3 + $0x3c] sm:$0xff]  ;;  %v725_v24 = vld [vmem:[#allocation3 + $0x34] sm:$0xff]  ;;  %v724_v33 = vld [vmem:[#allocation3 + $0x2c] sm:$0xff]  ;;  %vm346_vm1 = vsmask.f32 7424 }
  0x1b   : > { %v381_v6 = vpack.c.b16 %v376_v3, %v376_v3  ;;  %v730_v20 = vld [vmem:[#allocation3 + $0x60] sm:$0xff]  ;;  %v721_v25 = vld [vmem:[#allocation3 + $0x10] sm:$0xff]  ;;  %v729_v29 = vld [vmem:[#allocation3 + $0x58] sm:$0xff]  ;;  %vm386_vm3 = vcmask 588800   ;;  %s517_s30 = sld [smem:[#allocation2]]  ;;  %s286_s16 = sand.u32 1, %s881_s24  }
  0x1c   : > { %s736_s18 = smul.u32 12, %s994_s17  ;;  %v430_v7 = vpack.c.b16 %v425_v4, %v425_v4  ;;  %v490_v8 = vpack.c.b16 %v485_v5, %v485_v5  ;;  %s296_s29 = scalar_lea.vmem %s1048_s1, %s994_s17  ;;  %v720_v34 = vld [vmem:[#allocation3 + $0x8] sm:$0xff]  ;;  %v728_v37 = vld [vmem:[#allocation3 + $0x50] sm:$0xff]  ;;  %v719_v42 = vld [vmem:[#allocation3] sm:$0xff] }
  0x1d   : > { %v392_v11 = vsel %vm390_vm0, %v381_v6, 0  ;;  %v791_v19 = vld [vmem:[%s296_s29] ss:$0 sm:$0xff]  ;;  %v723_v41 = vld [vmem:[#allocation3 + $0x24] sm:$0xff]  ;;  %s718_s10 = sshll.u32 %s994_s17, 4  ;;  %s658_s17 = sshll.u32 %s286_s16, 4 }
  0x1e   : > { %s293_s21 = scalar_lea.vmem %s1047_s0, %s736_s18  ;;  %v438_v12 = vsel %vm390_vm0, %v430_v7, 0  ;;  %v499_v13 = vsel %vm390_vm0, %v490_v8, 0  ;;  %397 = vmatpush.bf16.msra.mxu0 %v392_v11  ;;  %v727_v45 = vld [vmem:[#allocation3 + $0x48] sm:$0xff]  ;;  %s301_s13 = scalar_lea.vmem %s1051_s4, %s718_s10  ;;  %v792_v59 = vld [vmem:[%s1050_s3] ss:$0 sm:$0xff] }
  0x1f   : > { %v733_v14 = vld [vmem:[%s293_s21] sm:$0xff]   ;;  %v305_v15 = vld [vmem:[%s293_s21 + $0x8] sm:$0x1]  ;;  %443 = vmatpush.bf16.msra.mxu1 %v438_v12  ;;  %504 = vmatpush.bf16.msra.mxu2 %v499_v13  ;;  %s731_s18 = sshll.u32 %s955_s5, 4  ;;  %s288_s22 = scalar_lea.vmem [#allocation6], %s658_s17 }
  0x20   : > { %v734_v16 = vunpack.c.l.bf16 %v733_v14  ;;  %v735_v17 = vunpack.c.h.bf16 %v733_v14  ;;  %v309_v18 = vunpack.c.l.bf16 %v305_v15  ;;  %v518_v53 = vld [vmem:[%s301_s13] sm:$0xff]  ;;  %v519_v63 = vld [vmem:[%s301_s13 + $0x8] sm:$0xff]  ;;  %s553_s21 = scalar_lea.hbm %s1053_s6, %s731_s18  ;;  %s554_s27 = sshll.u32 %s288_s22, 4  ;;  %s555_s27 = int_to_ptr.vmem [resolvable:$true] %s554_s27 }
  0x21   : > { %v520_v54 = vstv %s517_s30  ;;  %s556_s29 = sshll.u32 %s553_s21, 4  ;;  %s542_s5 = scalar_lea.sflag [#allocation5], %s286_s16  ;;  %s557_s29 = int_to_ptr.hbm [resolvable:$true] %s556_s29 }
  0x22   : > { %v313_v21 = vmul.f32 %v791_v19, %v734_v16  ;;  %v314_v22 = vmul.f32 %v791_v19, %v735_v17  ;;  %v315_v23 = vmul.f32 %v791_v19, %v309_v18  ;;  %398 = vmatpush.bf16.msra.mxu0 %v726_v9  ;;  %v521_v56 = vmul.f32 %v520_v54, %v518_v53  ;;  %s837_s30 = sshra.s32 %s557_s29, 4  ;;  %s843_s13 = scalar_lea.hbm %s1053_s6, 32  ;;  %s838_s30 = int_to_ptr.hbm [resolvable:$true] %s837_s30 }
  0x23   : > { %444 = vmatpush.bf16.msra.mxu1 %v722_v10  ;;  %505 = vmatpush.bf16.msra.mxu2 %v730_v20  ;;  %v522_v3 = vmul.f32 %v520_v54, %v519_v63  ;;  %s839_s10 = scalar_lea.hbm %s838_s30, 16  ;;  %p844_p3 = scmp.lt.s32.totalorder %s838_s30, %s1053_s6 }
  0x24   : > { %v316_v26 = vpack.c.bf16 %v313_v21, %v313_v21  ;;  %v317_v27 = vpack.c.bf16 %v314_v22, %v314_v22  ;;  %v318_v28 = vpack.c.bf16 %v315_v23, %v315_v23  ;;  %p840_p0 = scmp.ne.s32.totalorder %s838_s30, %s839_s10  ;;  %p845_p4 = scmp.lt.s32.totalorder %s843_s13, %s839_s10 }
  0x26   : > { %v341_v30 = vunpack.c.l.b16 %v316_v26  ;;  %v342_v31 = vunpack.c.l.b16 %v317_v27  ;;  %v343_v32 = vunpack.c.l.b16 %v318_v28  ;;  %399 = vmatpush.bf16.msra.mxu0 %v725_v24  ;;  %p841_p1 = pnand %p840_p0, %p972_p5  ;;  %p846_p7 = por %p845_p4, %p844_p3 }
  0x27   : > { %445 = vmatpush.bf16.msra.mxu1 %v721_v25  ;;  %506 = vmatpush.bf16.msra.mxu2 %v729_v29 }
  0x28   : > { %v344_v35 = vpack.c.b16 %v342_v31, %v341_v30  ;;  %v345_v36 = vpack.c.b16 %v343_v32, %v343_v32  ;;  %p842_p2 = pneg %p841_p1 }
  0x2a   : > { %v348_v38 = vshrl.u32 %v344_v35, 16  ;;  %v350_v39 = vshll.u32 %v344_v35, 16  ;;  %v355_v40 = vshll.u32 %v345_v36, 16  ;;  %400 = vmatpush.bf16.msra.mxu0 %v724_v33  ;;  %v465_v46 = vrot.slane %v344_v35, 1  ;;  %p847_p8 = pnand %p846_p7, %p842_p2 }
  0x2b   : > { %446 = vmatpush.bf16.msra.mxu1 %v720_v34  ;;  %507 = vmatpush.bf16.msra.mxu2 %v728_v37  ;;  %v466_v47 = vrot.slane %v345_v36, 1 }
  0x2c   : > { %v352_v43 = vrot.slane %v350_v39, 1  ;;  %v357_v44 = vrot.slane %v355_v40, 1 }
  0x2d   : > { %v467_v50 = vsel %vm464_vm2, %v465_v46, %v466_v47 }
  0x2e   : > { %v353_v48 = vor.u32 %v352_v43, %v348_v38  ;;  %401 = vmatpush.bf16.msra.mxu0 %v723_v41 }
  0x2f   : > { %447 = vmatpush.bf16.msra.mxu1 %v719_v42  ;;  %508 = vmatpush.bf16.msra.mxu2 %v727_v45 }
  0x30   : > { %v358_v49 = vsel %vm346_vm1, %v353_v48, %v357_v44 }
  0x31   : > { %678 = vmatmul.msk.bf16.vlgmr.msra.gmra.mxu0 %vm386_vm3, %v358_v49 }
  0x32   : > { %695 = vmatmul.msk.bf16.vlgmr.msra.gmra.mxu1 %vm386_vm3, %v344_v35  ;;  %712 = vmatmul.msk.bf16.vlgmr.msra.gmra.mxu2 %vm386_vm3, %v467_v50 }
  0xae   : > { %v403_v51 = vpop.f32.mrf.mxu0 }
  0xaf   : > { %v449_v52 = vpop.f32.mrf.mxu1 }
  0xb0   : > { %v450_v55 = vadd.f32 %v449_v52, %v403_v51 }
  0xb5   : > { %v510_v57 = vpop.f32.mrf.mxu2 }
  0xb6   : > { %v515_v58 = vadd.f32 %v510_v57, %v450_v55  ;;  %v405_v61 = vpop.f32.mrf.mxu0 }
  0xb7   : > { %v451_v62 = vpop.f32.mrf.mxu1 }
  0xb8   : > { %v523_v60 = vadd.f32 %v521_v56, %v515_v58  ;;  %v452_v2 = vadd.f32 %v451_v62, %v405_v61 }
  0xba   : > { %v529_v0 = vadd.f32 %v792_v59, %v523_v60 }
  0xbc   : > { %vm531_vm4 = vcmp.ge.f32.partialorder %v529_v0, 0.0  ;;  %v533_v1 = vmul.f32 0.2, %v529_v0 }
  0xbd   : > { %v512_v4 = vpop.f32.mrf.mxu2 }
  0xbe   : > { %v535_v5 = vsel %vm531_vm4, %v529_v0, %v533_v1  ;;  %v516_v6 = vadd.f32 %v512_v4, %v452_v2 }
  0xbf   : > { %v537_v7 = vmul.f32 1.4142135, %v535_v5 }
  0xc0   : > { %v524_v8 = vadd.f32 %v522_v3, %v516_v6 }
  0xc1   : > { %539 = vst [vmem:[%s288_s22] sm:$0xff] %v537_v7 }
  0xc2   : > { %v530_v9 = vadd.f32 %v792_v59, %v524_v8 }
  0xc4   : > { %vm532_vm5 = vcmp.ge.f32.partialorder %v530_v9, 0.0  ;;  %v534_v10 = vmul.f32 0.2, %v530_v9 }
  0xc6   : > { %v536_v11 = vsel %vm532_vm5, %v530_v9, %v534_v10 }
  0xc7   : > { %v538_v12 = vmul.f32 1.4142135, %v536_v11 }
  0xc9   : > { %540 = vst [vmem:[%s288_s22 + $0x8] sm:$0xff] %v538_v12 }
  0xca   : > { %850 = shalt.err (!%p847_p8)
}
  0xcb   : > { %s894_s16 = smov 128   ;;  %s895_s17 = smov 8  }
  0xcc   : > { %741 = dma.vmem_to_hbm [thread:$0]  (%p972_p5), %s555_s27, 256, %s557_s29, %s542_s5, %s894_s16, %s894_s16, %s895_s17  }
  0xcd PF: > { %p753_p9 = scmp.ge.s32.totalorder %s889_s26, 2  ;;  %s571_s18 = sand.u32 1, %s877_s23  }
  0xce   : > { %s572_s19 = scalar_lea.sflag [#allocation5], %s571_s18 }
  0xcf   : > { %p748_p10 = pnand %p753_p9, %p976_p6 }
  0xd1   : > { %p749_p11 = pneg %p748_p10 }
  0xd3   : > { %872 = dma.done.wait (%p749_p11), %s572_s19, 256  }
  0xd4   : > { %874 = vsyncadd (%p749_p11), %s572_s19, 4294967040  ;;  %p18_p12 = scmp.ge.s32.totalorder %s959_s28, 4   ;;  %s1056_s23 = smov %s881_s24 }
  0xd5   : > { %s1057_s24 = smov %s885_s25  ;;  %s1058_s25 = smov %s970_s7 }
  0xd6   : > { %s1059_s26 = smov %s959_s28  ;;  %20 = sbr.rel (!%p18_p12) target bundleno = 6 (0x6), region = 92 }
  0xdb   :  { %578 = vsyncpa [#allocation4], 1 }
  0xdc   :  { %580 = vsyncpa [#allocation4 + $0x1], 1 }
  0xdd   :  { %581 = vsyncpa [#allocation5], 1 }
  0xde   :  { %583 = vsyncpa [#allocation5 + $0x1], 1 }

</bundles_post_ra>
